<compile_context>
chip_gen: v7x
topology: tpu7x:2x2x1
jax: 0.10.0
libtpu: 0.0.40
codegen_flags: <defaults>
</compile_context>

<pallas_src>
import math
import jax
import jax.numpy as jnp
from jax.experimental import pallas as pl
from jax.experimental.pallas import tpu as pltpu

INPUT_SIZE = 16
HIDDEN_SIZES = [64, 128, 64]
OUTPUT_SIZE = 8
PADDED_W4_OUT = 128       # W4 padded to 128 cols for the MXU; store only first 8
DEFAULT_TILE_B = 4096     # batch tile; multiple of 8, amortizes per-step overhead


def _round_up(x, m):
    return ((x + m - 1) // m) * m


def _mlp_kernel(x_ref, w1_ref, w2_ref, w3_ref, w4_ref, b_ref, o_ref):
    # Biases live in one (4, 128) f32 ref; each row holds one layer's bias, zero-padded.
    b1 = b_ref[0:1, 0:HIDDEN_SIZES[0]]   # (1, 64)
    b2 = b_ref[1:2, 0:HIDDEN_SIZES[1]]   # (1, 128)
    b3 = b_ref[2:3, 0:HIDDEN_SIZES[2]]   # (1, 64)
    b4 = b_ref[3:4, 0:OUTPUT_SIZE]       # (1, 8)

    # Four MXU matmuls (bf16 operands, f32 accumulation); bias + ReLU on the VPU in f32.
    h = jnp.dot(x_ref[...], w1_ref[...], preferred_element_type=jnp.float32)
    h = jnp.maximum(h + b1, 0.0)                       # Linear -> ReLU (Dropout = id)

    h = jnp.dot(h.astype(jnp.bfloat16), w2_ref[...], preferred_element_type=jnp.float32)
    h = jnp.maximum(h + b2, 0.0)

    h = jnp.dot(h.astype(jnp.bfloat16), w3_ref[...], preferred_element_type=jnp.float32)
    h = jnp.maximum(h + b3, 0.0)

    out = jnp.dot(h.astype(jnp.bfloat16), w4_ref[...], preferred_element_type=jnp.float32)
    # Only the 8 real output columns are added to bias and stored (16x less writeback
    # than the padded 128-wide store; masked vst on 8 of 128 lanes is accepted).
    o_ref[...] = (out[:, :OUTPUT_SIZE] + b4).astype(o_ref.dtype)


def _prep_params(params):
    """Cast weights to bf16, pad W4 to 128 output cols (MXU), stack biases into (4,128) f32."""
    (w1, b1), (w2, b2), (w3, b3), (w4, b4) = params
    w4p = jnp.pad(w4, ((0, 0), (0, PADDED_W4_OUT - OUTPUT_SIZE)))
    weights = (w1.astype(jnp.bfloat16), w2.astype(jnp.bfloat16),
               w3.astype(jnp.bfloat16), w4p.astype(jnp.bfloat16))
    rows = []
    for b in (b1, b2, b3, b4):
        rows.append(jnp.pad(b.astype(jnp.float32), ((0, 0), (0, 128 - b.shape[1]))))
    biases = jnp.concatenate(rows, axis=0)             # (4, 128) f32
    return weights, biases


def _vmem_limit_bytes(tb):
    """Per-step footprint (double-buffered x/out blocks + resident weights + f32/bf16
    layer intermediates), with 2x headroom; kept within v7x's 64 MiB physical VMEM."""
    inter = tb * (64 + 128 + 64 + 128) * 4 + tb * (64 + 128 + 64) * 2
    io = 2 * (tb * INPUT_SIZE * 2 + tb * OUTPUT_SIZE * 4)
    weights = 2 * (2 * (INPUT_SIZE * 64 + 64 * 128 + 128 * 64 + 64 * PADDED_W4_OUT)
                   + 4 * 128 * 4)
    est = inter + io + weights
    return int(min(max(2 * est, 16 << 20), 48 << 20))


def cloud_stable_model_forward(x, params, tile_b=DEFAULT_TILE_B):
    """x: (B, 16) float; params: list of (W(in,out), b(1,out)) for the 4 layers."""
    batch = x.shape[0]
    (w1, w2, w3, w4p), biases = _prep_params(params)

    # bf16 input halves input DMA; precision covered by the bf16-matmul tolerance.
    x = x.astype(jnp.bfloat16)

    # Batch tile: multiple of 8, capped by tile_b.  No wrapper padding/slicing: Pallas
    # handles a partial last block (batch rows are independent through all matmuls).
    tb = min(tile_b, _round_up(batch, 8))
    # v7x megacore: keep >= 2 grid steps when the batch is large enough to matter.
    if batch >= 2048 and pl.cdiv(batch, tb) < 2:
        tb = _round_up(pl.cdiv(batch, 2), 8)
    grid = (pl.cdiv(batch, tb),)

    flops = 2 * batch * (INPUT_SIZE * HIDDEN_SIZES[0]
                         + HIDDEN_SIZES[0] * HIDDEN_SIZES[1]
                         + HIDDEN_SIZES[1] * HIDDEN_SIZES[2]
                         + HIDDEN_SIZES[2] * PADDED_W4_OUT)
    param_bytes = 2 * (INPUT_SIZE * HIDDEN_SIZES[0] + HIDDEN_SIZES[0] * HIDDEN_SIZES[1]
                       + HIDDEN_SIZES[1] * HIDDEN_SIZES[2]
                       + HIDDEN_SIZES[2] * PADDED_W4_OUT) + 4 * 128 * 4
    bytes_accessed = batch * (INPUT_SIZE * 2 + OUTPUT_SIZE * 4) + param_bytes

    out = pl.pallas_call(
        _mlp_kernel,
        out_shape=jax.ShapeDtypeStruct((batch, OUTPUT_SIZE), jnp.float32),
        grid=grid,
        in_specs=[
            pl.BlockSpec((tb, INPUT_SIZE), lambda i: (i, 0)),                  # x (pipelined)
            pl.BlockSpec((INPUT_SIZE, HIDDEN_SIZES[0]), lambda i: (0, 0)),     # w1 (resident)
            pl.BlockSpec((HIDDEN_SIZES[0], HIDDEN_SIZES[1]), lambda i: (0, 0)),
            pl.BlockSpec((HIDDEN_SIZES[1], HIDDEN_SIZES[2]), lambda i: (0, 0)),
            pl.BlockSpec((HIDDEN_SIZES[2], PADDED_W4_OUT), lambda i: (0, 0)),  # w4 padded
            pl.BlockSpec((4, 128), lambda i: (0, 0)),                          # stacked biases
        ],
        out_specs=pl.BlockSpec((tb, OUTPUT_SIZE), lambda i: (i, 0)),
        compiler_params=pltpu.CompilerParams(
            dimension_semantics=("parallel",),
            vmem_limit_bytes=_vmem_limit_bytes(tb)),
        cost_estimate=pl.CostEstimate(flops=flops, transcendentals=0,
                                      bytes_accessed=bytes_accessed),
    )(x, w1, w2, w3, w4p, biases)

    return out


def _xavier_uniform(key, fan_in, fan_out):
    # Matches torch.nn.init.xavier_uniform_ bound; weight laid out as (in, out).
    bound = math.sqrt(6.0 / (fan_in + fan_out))
    return jax.random.uniform(key, (fan_in, fan_out), jnp.float32,
                              minval=-bound, maxval=bound)


def init_params(key):
    sizes = [INPUT_SIZE] + HIDDEN_SIZES + [OUTPUT_SIZE]
    params = []
    for i in range(len(sizes) - 1):
        key, sub = jax.random.split(key)
        w = _xavier_uniform(sub, sizes[i], sizes[i + 1])
        b = jnp.zeros((1, sizes[i + 1]), jnp.float32)   # zero-init bias, kept 2D for TPU
        params.append((w, b))
    return params


def reference_forward(x, params):
    h = x
    for i, (w, b) in enumerate(params):
        h = h @ w + b
        if i < len(params) - 1:
            h = jnp.maximum(h, 0.0)
    return h


if __name__ == "__main__":
    key = jax.random.PRNGKey(0)
    pkey, xkey = jax.random.split(key)
    params = init_params(pkey)

    batch = 8
    x = jax.random.normal(xkey, (batch, INPUT_SIZE), jnp.float32)

    out = cloud_stable_model_forward(x, params)
    out = jax.block_until_ready(out)

    ref = reference_forward(x, params)
    assert out.shape == (batch, OUTPUT_SIZE), out.shape
    # bf16 matmul operands / bf16 input (f32 accumulation) -> loosened tolerance vs f32 ref.
    assert jnp.allclose(out, ref, atol=5e-2, rtol=5e-2), "mismatch vs reference"

    print("KERNEL_OK")
</pallas_src>

<mosaic_0001>
module attributes {stable_mosaic.version = 11 : i64} {
  func.func @_mlp_kernel(%arg0: i32, %arg1: memref<8x16xbf16, #tpu.memory_space<vmem>>, %arg2: memref<16x64xbf16, #tpu.memory_space<vmem>>, %arg3: memref<64x128xbf16, #tpu.memory_space<vmem>>, %arg4: memref<128x64xbf16, #tpu.memory_space<vmem>>, %arg5: memref<64x128xbf16, #tpu.memory_space<vmem>>, %arg6: memref<4x128xf32, #tpu.memory_space<vmem>>, %arg7: memref<8x8xf32, #tpu.memory_space<vmem>>) attributes {dimension_semantics = [#tpu.dimension_semantics<parallel>], iteration_bounds = array<i64: 1>, scalar_prefetch = 0 : i64, scratch_operands = 0 : i64, tpu.core_type = #tpu.core_type<tc>, window_params = [{transform_indices = @transform_0, window_bounds = array<i64: 8, 16>}, {pipeline_mode = #tpu.pipeline_mode<synchronous>, transform_indices = @transform_1, window_bounds = array<i64: 16, 64>}, {pipeline_mode = #tpu.pipeline_mode<synchronous>, transform_indices = @transform_2, window_bounds = array<i64: 64, 128>}, {pipeline_mode = #tpu.pipeline_mode<synchronous>, transform_indices = @transform_3, window_bounds = array<i64: 128, 64>}, {pipeline_mode = #tpu.pipeline_mode<synchronous>, transform_indices = @transform_4, window_bounds = array<i64: 64, 128>}, {pipeline_mode = #tpu.pipeline_mode<synchronous>, transform_indices = @transform_5, window_bounds = array<i64: 4, 128>}, {transform_indices = @transform_6, window_bounds = array<i64: 8, 8>}]} {
    %c0 = arith.constant 0 : index
    %c0_0 = arith.constant 0 : index
    %0 = vector.load %arg6[%c0, %c0_0] : memref<4x128xf32, #tpu.memory_space<vmem>>, vector<1x64xf32>
    %c1 = arith.constant 1 : index
    %c0_1 = arith.constant 0 : index
    %1 = vector.load %arg6[%c1, %c0_1] : memref<4x128xf32, #tpu.memory_space<vmem>>, vector<1x128xf32>
    %c2 = arith.constant 2 : index
    %c0_2 = arith.constant 0 : index
    %2 = vector.load %arg6[%c2, %c0_2] : memref<4x128xf32, #tpu.memory_space<vmem>>, vector<1x64xf32>
    %c3 = arith.constant 3 : index
    %c0_3 = arith.constant 0 : index
    %3 = vector.load %arg6[%c3, %c0_3] : memref<4x128xf32, #tpu.memory_space<vmem>>, vector<1x8xf32>
    %c0_4 = arith.constant 0 : index
    %c0_5 = arith.constant 0 : index
    %4 = vector.load %arg1[%c0_4, %c0_5] : memref<8x16xbf16, #tpu.memory_space<vmem>>, vector<8x16xbf16>
    %c0_6 = arith.constant 0 : index
    %c0_7 = arith.constant 0 : index
    %5 = vector.load %arg2[%c0_6, %c0_7] : memref<16x64xbf16, #tpu.memory_space<vmem>>, vector<16x64xbf16>
    %cst = arith.constant dense<0.000000e+00> : vector<8x64xf32>
    %6 = tpu.matmul %4, %5, %cst {dimension_numbers = #tpu.dot_dimension_numbers<[1], [0], [0], [1], [0, 0, 1, 1], [], []>} : vector<8x16xbf16>, vector<16x64xbf16>, vector<8x64xf32> -> vector<8x64xf32>
    %7 = vector.broadcast %0 : vector<1x64xf32> to vector<8x64xf32>
    %8 = arith.addf %6, %7 : vector<8x64xf32>
    %cst_8 = arith.constant 0.000000e+00 : f32
    %9 = vector.broadcast %cst_8 : f32 to vector<8x64xf32>
    %10 = arith.maximumf %8, %9 : vector<8x64xf32>
    %11 = arith.truncf %10 : vector<8x64xf32> to vector<8x64xbf16>
    %c0_9 = arith.constant 0 : index
    %c0_10 = arith.constant 0 : index
    %12 = vector.load %arg3[%c0_9, %c0_10] : memref<64x128xbf16, #tpu.memory_space<vmem>>, vector<64x128xbf16>
    %cst_11 = arith.constant dense<0.000000e+00> : vector<8x128xf32>
    %13 = tpu.matmul %11, %12, %cst_11 {dimension_numbers = #tpu.dot_dimension_numbers<[1], [0], [0], [1], [0, 0, 1, 1], [], []>} : vector<8x64xbf16>, vector<64x128xbf16>, vector<8x128xf32> -> vector<8x128xf32>
    %14 = vector.broadcast %1 : vector<1x128xf32> to vector<8x128xf32>
    %15 = arith.addf %13, %14 : vector<8x128xf32>
    %cst_12 = arith.constant 0.000000e+00 : f32
    %16 = vector.broadcast %cst_12 : f32 to vector<8x128xf32>
    %17 = arith.maximumf %15, %16 : vector<8x128xf32>
    %18 = arith.truncf %17 : vector<8x128xf32> to vector<8x128xbf16>
    %c0_13 = arith.constant 0 : index
    %c0_14 = arith.constant 0 : index
    %19 = vector.load %arg4[%c0_13, %c0_14] : memref<128x64xbf16, #tpu.memory_space<vmem>>, vector<128x64xbf16>
    %cst_15 = arith.constant dense<0.000000e+00> : vector<8x64xf32>
    %20 = tpu.matmul %18, %19, %cst_15 {dimension_numbers = #tpu.dot_dimension_numbers<[1], [0], [0], [1], [0, 0, 1, 1], [], []>} : vector<8x128xbf16>, vector<128x64xbf16>, vector<8x64xf32> -> vector<8x64xf32>
    %21 = vector.broadcast %2 : vector<1x64xf32> to vector<8x64xf32>
    %22 = arith.addf %20, %21 : vector<8x64xf32>
    %cst_16 = arith.constant 0.000000e+00 : f32
    %23 = vector.broadcast %cst_16 : f32 to vector<8x64xf32>
    %24 = arith.maximumf %22, %23 : vector<8x64xf32>
    %25 = arith.truncf %24 : vector<8x64xf32> to vector<8x64xbf16>
    %c0_17 = arith.constant 0 : index
    %c0_18 = arith.constant 0 : index
    %26 = vector.load %arg5[%c0_17, %c0_18] : memref<64x128xbf16, #tpu.memory_space<vmem>>, vector<64x128xbf16>
    %cst_19 = arith.constant dense<0.000000e+00> : vector<8x128xf32>
    %27 = tpu.matmul %25, %26, %cst_19 {dimension_numbers = #tpu.dot_dimension_numbers<[1], [0], [0], [1], [0, 0, 1, 1], [], []>} : vector<8x64xbf16>, vector<64x128xbf16>, vector<8x128xf32> -> vector<8x128xf32>
    %28 = vector.extract_strided_slice %27 {offsets = [0, 0], sizes = [8, 8], strides = [1, 1]} : vector<8x128xf32> to vector<8x8xf32>
    %29 = vector.broadcast %3 : vector<1x8xf32> to vector<8x8xf32>
    %30 = arith.addf %28, %29 : vector<8x8xf32>
    %c0_20 = arith.constant 0 : index
    %c0_21 = arith.constant 0 : index
    %31 = vector.load %arg7[%c0_20, %c0_21] : memref<8x8xf32, #tpu.memory_space<vmem>>, vector<8x8xf32>
    tpu.vector_store %arg7[%c0_20, %c0_21], %30 {strides = array<i32>} : memref<8x8xf32, #tpu.memory_space<vmem>>, vector<8x8xf32>,
    return
  }
  func.func @transform_0(%arg0: i32) -> (i32, i32) {
    %c0_i32 = arith.constant 0 : i32
    %c0_i32_0 = arith.constant 0 : i32
    return %arg0, %c0_i32 : i32, i32
  }
  func.func @transform_1(%arg0: i32) -> (i32, i32) {
    %c0_i32 = arith.constant 0 : i32
    %c0_i32_0 = arith.constant 0 : i32
    %c0_i32_1 = arith.constant 0 : i32
    return %c0_i32, %c0_i32_0 : i32, i32
  }
  func.func @transform_2(%arg0: i32) -> (i32, i32) {
    %c0_i32 = arith.constant 0 : i32
    %c0_i32_0 = arith.constant 0 : i32
    %c0_i32_1 = arith.constant 0 : i32
    return %c0_i32, %c0_i32_0 : i32, i32
  }
  func.func @transform_3(%arg0: i32) -> (i32, i32) {
    %c0_i32 = arith.constant 0 : i32
    %c0_i32_0 = arith.constant 0 : i32
    %c0_i32_1 = arith.constant 0 : i32
    return %c0_i32, %c0_i32_0 : i32, i32
  }
  func.func @transform_4(%arg0: i32) -> (i32, i32) {
    %c0_i32 = arith.constant 0 : i32
    %c0_i32_0 = arith.constant 0 : i32
    %c0_i32_1 = arith.constant 0 : i32
    return %c0_i32, %c0_i32_0 : i32, i32
  }
  func.func @transform_5(%arg0: i32) -> (i32, i32) {
    %c0_i32 = arith.constant 0 : i32
    %c0_i32_0 = arith.constant 0 : i32
    %c0_i32_1 = arith.constant 0 : i32
    return %c0_i32, %c0_i32_0 : i32, i32
  }
  func.func @transform_6(%arg0: i32) -> (i32, i32) {
    %c0_i32 = arith.constant 0 : i32
    %c0_i32_0 = arith.constant 0 : i32
    return %arg0, %c0_i32 : i32, i32
  }
}

</mosaic_0001>

<bundles_post_ra>
// kernel: tpu_custom_call.1
= control target key start
LH: loop header
LB: loop body
LE: loop exit
PB: predicated region body
PF: predicated region fallthrough
CT: control target
= control target key end

     0   :  { %v515_v1 = vmov 0.0   ;;  %vm516_vm0 = vmmov 0   ;;  %vm42_vm1 = vcmask 130048   ;;  %s658_s0 = inlined_call_operand.vmem [shape: bf16[8,16], index: 0, kind: input, shape index: {}]   ;;  %s659_s1 = inlined_call_operand.vmem [shape: bf16[16,64], index: 1, kind: input, shape index: {}]   ;;  %s660_s2 = inlined_call_operand.vmem [shape: bf16[64,128], index: 2, kind: input, shape index: {}]   ;;  %s661_s3 = inlined_call_operand.vmem [shape: bf16[128,64], index: 3, kind: input, shape index: {}]   ;;  %s662_s4 = inlined_call_operand.vmem [shape: bf16[64,128], index: 4, kind: input, shape index: {}]   ;;  %s663_s5 = inlined_call_operand.vmem [shape: f32[4,128], index: 5, kind: input, shape index: {}]   ;;  %s664_s6 = inlined_call_operand.hbm [shape: f32[8,8], index: 6, kind: output, shape index: {}]  }
   0x1   :  { %v474_v0 = vld [vmem:[%s659_s1] sm:$0xff]   ;;  %421 = vmatprep.subr.bf16.mxu0 %v515_v1  ;;  %427 = vmatprep.subr.bf16.mxu1 %v515_v1  ;;  %v476_v4 = vld [vmem:[%s660_s2 + $0x8] sm:$0xff]  }
   0x2   :  { %v29_v2 = vld [vmem:[%s658_s0] sm:$0xf]  ;;  %422 = vmatpush3.bf16.msra.mxu0 %v474_v0  ;;  %423 = vmatprep.mubr.msk.bf16.mxu0 %vm516_vm0, %v515_v1 }
   0x3   :  { %v475_v3 = vld [vmem:[%s660_s2] sm:$0xff]   ;;  %435 = vmatprep.mubr.msk.bf16.mxu1 %vm516_vm0, %v515_v1  ;;  %439 = vmatprep.subr.bf16.mxu0 %v515_v1 }
   0x4   :  { %428 = vmatpush3.bf16.msra.mxu1 %v475_v3 }
   0x5   :  { %424 = vmatmul.mubr.msk.bf16.vlgmr.msra.gmra.mrb[0].mxu0 %vm42_vm1, %v29_v2  ;;  %429 = vmatprep.subr.bf16.mxu1 %v515_v1 }
   0x6   :  { %455 = vmatprep.mubr.msk.bf16.mxu0 %vm516_vm0, %v515_v1 }
   0x8   :  { %430 = vmatpush3.bf16.msra.mxu1 %v476_v4 }
   0x9   :  { %431 = vmatprep.subr.bf16.mxu1 %v515_v1 }
   0xa   :  { %11 = vsyncpa [#allocation3], 0  ;;  %v477_v5 = vld [vmem:[%s660_s2 + $0x10] sm:$0xff]   ;;  %v478_v6 = vld [vmem:[%s660_s2 + $0x18] sm:$0xff]   ;;  %vm124_vm2 = vcmask 523264   ;;  %s517_s11 = smov [#allocation2]  }
   0xb   :  { %v479_v7 = vld [vmem:[%s661_s3] sm:$0xff]   ;;  %v480_v8 = vld [vmem:[%s661_s3 + $0x8] sm:$0xff]   ;;  %v481_v9 = vld [vmem:[%s661_s3 + $0x10] sm:$0xff]   ;;  %vm360_vm3 = vcmask 64512  }
   0xc   :  { %432 = vmatpush3.bf16.msra.mxu1 %v477_v5  ;;  %440 = vmatpush3.bf16.msra.mxu0 %v479_v7  ;;  %v482_v10 = vld [vmem:[%s661_s3 + $0x18] sm:$0xff]   ;;  %v483_v11 = vld [vmem:[%s661_s3 + $0x20] sm:$0xff]   ;;  %v484_v12 = vld [vmem:[%s661_s3 + $0x28] sm:$0xff]  }
   0xd   :  { %433 = vmatprep.subr.bf16.mxu1 %v515_v1  ;;  %441 = vmatprep.subr.bf16.mxu0 %v515_v1  ;;  %v376_v13 = vld [vmem:[%s663_s5] ss:$0 sm:$0xff]  ;;  %v485_v21 = vld [vmem:[%s661_s3 + $0x30] sm:$0xff]   ;;  %v486_v22 = vld [vmem:[%s661_s3 + $0x38] sm:$0xff]  }
   0xe   :  { %v487_v23 = vld [vmem:[%s662_s4] sm:$0xff]   ;;  %v488_v24 = vld [vmem:[%s662_s4 + $0x8] sm:$0xff]   ;;  %v489_v33 = vld [vmem:[%s662_s4 + $0x10] sm:$0xff]  }
   0xf   :  { %v379_v25 = vld [vmem:[%s663_s5 + $0x1] ss:$0 sm:$0xff]  ;;  %v490_v34 = vld [vmem:[%s662_s4 + $0x18] sm:$0xff]   ;;  %v385_v35 = vld [vmem:[%s663_s5 + $0x2] ss:$0 sm:$0xff]  ;;  %s368_s4 = sshll.u32 %s517_s11, 4  ;;  %s369_s4 = int_to_ptr.vmem [resolvable:$true] %s368_s4 }
  0x10   :  { %434 = vmatpush3.bf16.msra.mxu1 %v478_v6  ;;  %442 = vmatpush3.bf16.msra.mxu0 %v480_v8  ;;  %v399_v43 = vld [vmem:[%s663_s5 + $0x3] ss:$0 sm:$0xff]  ;;  %s491_s12 = scalar_lea.vmem %s369_s4, 128  ;;  %p496_p1 = scmp.lt.s32.totalorder %s369_s4, %s369_s4 }
  0x11   :  { %459 = vmatprep.subr.bf16.mxu1 %v515_v1  ;;  %443 = vmatprep.subr.bf16.mxu0 %v515_v1  ;;  %p492_p0 = scmp.ne.s32.totalorder %s369_s4, %s491_s12  ;;  %p497_p2 = scmp.lt.s32.totalorder %s491_s12, %s491_s12 }
  0x13   :  { %p498_p3 = por %p497_p2, %p496_p1 }
  0x14   :  { %444 = vmatpush3.bf16.msra.mxu0 %v481_v9 }
  0x15   :  { %445 = vmatprep.subr.bf16.mxu0 %v515_v1  ;;  %p499_p4 = pnand %p498_p3, %p492_p0 }
  0x18   :  { %446 = vmatpush3.bf16.msra.mxu0 %v482_v10 }
  0x19   :  { %447 = vmatprep.subr.bf16.mxu0 %v515_v1 }
  0x1c   :  { %448 = vmatpush3.bf16.msra.mxu0 %v483_v11 }
  0x1d   :  { %449 = vmatprep.subr.bf16.mxu0 %v515_v1 }
  0x20   :  { %450 = vmatpush3.bf16.msra.mxu0 %v484_v12 }
  0x21   :  { %451 = vmatprep.subr.bf16.mxu0 %v515_v1 }
  0x24   :  { %452 = vmatpush3.bf16.msra.mxu0 %v485_v21 }
  0x25   :  { %453 = vmatprep.subr.bf16.mxu0 %v515_v1 }
  0x28   :  { %454 = vmatpush3.bf16.msra.mxu0 %v486_v22 }
  0xd8   :  { %v80_v14 = vpop.f32.mrb[0].mxu0 }
  0xd9   :  { %v81_v15 = vadd.f32 %v376_v13, %v80_v14  ;;  %v425_v16 = vpop.f32.mrb[1].mxu0 }
  0xda   :  { %v83_v17 = vpop.f32.mrb[2].mxu0 }
  0xdb   :  { %v86_v18 = vmax.f32 %v81_v15, 0.0  ;;  %v426_v19 = vpop.f32.mrb[3].mxu0 }
  0xdd   :  { %v87_v20 = vpack.c.bf16 %v86_v18, %v86_v18 }
  0xdf   :  { %436 = vmatmul.mubr.msk.bf16.vlgmr.msra.gmra.mrb[0].mxu1 %vm124_vm2, %v87_v20 }
  0xe0   :  { %467 = vmatprep.mubr.msk.bf16.mxu1 %vm516_vm0, %v515_v1  ;;  %460 = vmatpush3.bf16.msra.mxu1 %v487_v23 }
  0xe1   :  { %461 = vmatprep.subr.bf16.mxu1 %v515_v1 }
  0xe4   :  { %462 = vmatpush3.bf16.msra.mxu1 %v488_v24 }
  0xe5   :  { %463 = vmatprep.subr.bf16.mxu1 %v515_v1 }
  0xe8   :  { %464 = vmatpush3.bf16.msra.mxu1 %v489_v33 }
  0xe9   :  { %465 = vmatprep.subr.bf16.mxu1 %v515_v1 }
  0xec   :  { %466 = vmatpush3.bf16.msra.mxu1 %v490_v34 }
 0x1b2   :  { %v162_v26 = vpop.f32.mrb[0].mxu1 }
 0x1b3   :  { %v163_v27 = vadd.f32 %v379_v25, %v162_v26  ;;  %v437_v28 = vpop.f32.mrb[1].mxu1 }
 0x1b4   :  { %v165_v29 = vpop.f32.mrb[2].mxu1 }
 0x1b5   :  { %v168_v30 = vmax.f32 %v163_v27, 0.0  ;;  %v438_v31 = vpop.f32.mrb[3].mxu1 }
 0x1b7   :  { %v169_v32 = vpack.c.bf16 %v168_v30, %v168_v30 }
 0x1b9   :  { %456 = vmatmul.mubr.bf16.vlgmr.msra.gmra.mrb[4].mxu0 %v169_v32 }
 0x28c   :  { %v272_v36 = vpop.f32.mrb[4].mxu0 }
 0x28d   :  { %v273_v37 = vadd.f32 %v385_v35, %v272_v36  ;;  %v457_v38 = vpop.f32.mrb[5].mxu0 }
 0x28e   :  { %v275_v39 = vpop.f32.mrb[6].mxu0 }
 0x28f   :  { %v278_v40 = vmax.f32 %v273_v37, 0.0  ;;  %v458_v41 = vpop.f32.mrb[7].mxu0 }
 0x291   :  { %v279_v42 = vpack.c.bf16 %v278_v40, %v278_v40 }
 0x293   :  { %468 = vmatmul.mubr.msk.bf16.vlgmr.msra.gmra.mrb[4].mxu1 %vm124_vm2, %v279_v42 }
 0x366   :  { %v349_v44 = vpop.f32.mrb[4].mxu1 }
 0x367   :  { %v359_v45 = vadd.f32 %v399_v43, %v349_v44  ;;  %v469_v46 = vpop.f32.mrb[5].mxu1 }
 0x368   :  { %v352_v47 = vpop.f32.mrb[6].mxu1 }
 0x369   :  { %v470_v48 = vpop.f32.mrb[7].mxu1  ;;  %361 = vst.msk [vmem:[#allocation2] sm:$0xff] %vm360_vm3, %v359_v45 }
 0x36a   :  { %502 = shalt.err (!%p499_p4)
}
 0x36b   :  { %s503_s5 = scalar_lea.hbm %s664_s6, 128 }
 0x36c   :  { %p504_p5 = scmp.ne.s32.totalorder %s664_s6, %s503_s5  ;;  %p507_p6 = scmp.lt.u32.totalorder %s503_s5, %s664_s6 }
 0x36e   :  { %p509_p7 = pnand %p507_p6, %p504_p5 }
 0x370   :  { %512 = shalt.err (!%p509_p7)
}
 0x371   :  { %371 = dma.vmem_to_hbm [thread:$0]  %s369_s4, 128, %s664_s6, [#allocation3]  }
 0x372   :  { %513 = dma.done.wait [#allocation3], 128  }
 0x373   :  { %514 = vsyncadd [#allocation3], 4294967168 }
 0x374   :  { %375 = vsyncpa [#allocation3], 1 }

</bundles_post_ra>
